<compile_context>
chip_gen: v6e
topology: v6e:2x2x1
jax: 0.10.0
libtpu: 0.0.40
codegen_flags: <defaults>
</compile_context>

<pallas_src>
import jax
import jax.numpy as jnp
from jax.experimental import pallas as pl
from jax.experimental.pallas import tpu as pltpu


def _round_up(x, m):
    return ((x + m - 1) // m) * m


def _attn_kernel(x_ref, wqk_ref, bqk_ref, wv_ref, o_ref):
    # In-kernel f32 -> bf16 cast of the activation tile (VPU has slack; avoids
    # a separate wrapper-side XLA pass over x in HBM).
    x_bf = x_ref[...].astype(jnp.bfloat16)
    # qk_scaled_logits = x @ (scale*Wq@Wk) + scale*(bq@Wk + bk)  -- scale pre-folded.
    s = jnp.dot(x_bf, wqk_ref[...],
                preferred_element_type=jnp.float32) + bqk_ref[...]
    # Row-wise softmax, all in f32.
    m = jnp.max(s, axis=-1, keepdims=True)
    p = jnp.exp(s - m)
    denom = jnp.sum(p, axis=-1, keepdims=True)
    attn = p * pl.reciprocal(denom, approx=True)      # EUP vrcp slot (free-ish)
    # out = attn @ W_v  (bf16 MXU inputs, f32 accumulation).
    o_ref[...] = jnp.dot(attn.astype(jnp.bfloat16), wv_ref[...],
                         preferred_element_type=jnp.float32).astype(o_ref.dtype)


def model_forward(x, wq, bq, wk, bk, wv, *, scale, tile_b=512,
                  out_dtype=jnp.float32):
    B, D = x.shape

    # ---- Fold chained linears AND the softmax scale (exact, once, in f32) ---
    wqk = scale * jnp.dot(wq, wk, preferred_element_type=jnp.float32)          # (D, D)
    bqk = scale * (jnp.dot(bq, wk, preferred_element_type=jnp.float32) + bk)   # (1, D)

    wqk_bf = wqk.astype(jnp.bfloat16)
    wv_bf = wv.astype(jnp.bfloat16)
    # x is passed as f32: the bf16 cast happens inside the kernel.

    # ---- Row-parallel grid over the batch; no wrapper-side padding ----------
    if B <= 8:
        tile_rows = B                 # single full-extent block (layout-legal)
    else:
        # >= 2 grid steps so the "parallel" axis shards across both v7x TCs;
        # multiple-of-8 rows satisfies the (8, 128) block constraint.
        tile_rows = max(8, min(tile_b, _round_up(pl.cdiv(B, 2), 8)))
    grid = (pl.cdiv(B, tile_rows),)
    b_total = grid[0] * tile_rows     # includes ragged-tail rows

    out_itemsize = jnp.dtype(out_dtype).itemsize
    cost = pl.CostEstimate(
        flops=2 * 2 * b_total * D * D,              # two (rows,D)x(D,D) matmuls
        transcendentals=b_total * D,                # softmax exp
        bytes_accessed=(B * D * 4                   # x read (f32)
                        + B * D * out_itemsize      # out write
                        + 2 * D * D * 2             # Wqk + Wv (bf16), resident
                        + D * 4),                   # folded bias (f32)
    )

    # VMEM budget: double-buffered x/out tiles + (worst-case double-buffered)
    # resident bf16 weights + sublane-padded bias, plus headroom.
    vmem_est = (2 * tile_rows * D * (4 + out_itemsize)
                + 2 * (2 * D * D * 2)
                + 2 * 8 * D * 4)
    vmem_limit = int(max(32 << 20, min(96 << 20, vmem_est * 5 // 4 + (1 << 20))))

    def build(single_buffer_weights):
        def resident(shape):
            if single_buffer_weights:
                # Constant index_map -> single-buffer to halve weight VMEM.
                return pl.BlockSpec(shape, lambda i: (0,) * len(shape),
                                    pipeline_mode=pl.Buffered(1))
            return pl.BlockSpec(shape, lambda i: (0,) * len(shape))

        return pl.pallas_call(
            _attn_kernel,
            out_shape=jax.ShapeDtypeStruct((B, D), out_dtype),
            grid=grid,
            in_specs=[
                pl.BlockSpec((tile_rows, D), lambda i: (i, 0)),   # x row tile (f32)
                resident((D, D)),                                 # Wqk (bf16, resident)
                resident((1, D)),                                 # bqk (f32, resident)
                resident((D, D)),                                 # Wv  (bf16, resident)
            ],
            out_specs=pl.BlockSpec((tile_rows, D), lambda i: (i, 0)),
            compiler_params=pltpu.CompilerParams(
                dimension_semantics=("parallel",),
                vmem_limit_bytes=vmem_limit),
            cost_estimate=cost,
        )

    try:
        return build(True)(x, wqk_bf, bqk, wv_bf)
    except Exception:
        # Fallback for JAX builds where pipeline_mode=pl.Buffered(1) is not
        # supported on the top-level pallas_call (perf-only knob).
        return build(False)(x, wqk_bf, bqk, wv_bf)


def model_forward_ref(x, wq, bq, wk, bk, wv, *, scale):
    q = x @ wq + bq
    qk = q @ wk + bk
    attn = jax.nn.softmax(qk * scale, axis=-1)
    return attn @ wv


if __name__ == "__main__":
    # Small, self-consistent shapes (the module's 1024-feature input shrunk to
    # D = 128 = dim_head * num_heads so key(query(x)) composes; num_heads = 1).
    # B = 48 gives a 2-step row-parallel grid (exercises the multi-block path).
    B = 48
    D = 128
    dim_head = D
    num_heads = 1
    scale = float(dim_head) ** (-0.5)

    key = jax.random.PRNGKey(0)
    kx, kq, kbq, kk, kbk, kv = jax.random.split(key, 6)

    x1 = jax.random.normal(kx, (B, D), dtype=jnp.float32)
    # Deterministic parameter init (Linear-like uniform fan-in init).
    bound = 1.0 / (D ** 0.5)
    wq = jax.random.uniform(kq,  (D, D), jnp.float32, -bound, bound)
    bq = jax.random.uniform(kbq, (1, D), jnp.float32, -bound, bound)
    wk = jax.random.uniform(kk,  (D, D), jnp.float32, -bound, bound)
    bk = jax.random.uniform(kbk, (1, D), jnp.float32, -bound, bound)
    wv = jax.random.uniform(kv,  (D, D), jnp.float32, -bound, bound)

    out = model_forward(x1, wq, bq, wk, bk, wv, scale=scale)
    out = jax.block_until_ready(out)

    ref = model_forward_ref(x1, wq, bq, wk, bk, wv, scale=scale)
    assert out.shape == (B, D)
    # bf16 MXU inputs + approx reciprocal -> loosened tolerance vs f32 reference.
    assert jnp.allclose(out, ref, atol=2e-2, rtol=2e-2), "mismatch vs reference"

    print("KERNEL_OK")
</pallas_src>

<mosaic_0001>
module attributes {stable_mosaic.version = 11 : i64} {
  func.func @_attn_kernel(%arg0: i32, %arg1: memref<24x128xf32, #tpu.memory_space<vmem>>, %arg2: memref<128x128xbf16, #tpu.memory_space<vmem>>, %arg3: memref<1x128xf32, #tpu.memory_space<vmem>>, %arg4: memref<128x128xbf16, #tpu.memory_space<vmem>>, %arg5: memref<24x128xf32, #tpu.memory_space<vmem>>) attributes {dimension_semantics = [#tpu.dimension_semantics<parallel>], iteration_bounds = array<i64: 2>, scalar_prefetch = 0 : i64, scratch_operands = 0 : i64, tpu.core_type = #tpu.core_type<tc>, window_params = [{transform_indices = @transform_0, window_bounds = array<i64: 24, 128>}, {pipeline_mode = #tpu.pipeline_mode<synchronous>, transform_indices = @transform_1, window_bounds = array<i64: 128, 128>}, {pipeline_mode = #tpu.pipeline_mode<synchronous>, transform_indices = @transform_2, window_bounds = array<i64: 1, 128>}, {pipeline_mode = #tpu.pipeline_mode<synchronous>, transform_indices = @transform_3, window_bounds = array<i64: 128, 128>}, {transform_indices = @transform_4, window_bounds = array<i64: 24, 128>}]} {
    %c0 = arith.constant 0 : index
    %c0_0 = arith.constant 0 : index
    %0 = vector.load %arg1[%c0, %c0_0] : memref<24x128xf32, #tpu.memory_space<vmem>>, vector<24x128xf32>
    %1 = arith.truncf %0 : vector<24x128xf32> to vector<24x128xbf16>
    %c0_1 = arith.constant 0 : index
    %c0_2 = arith.constant 0 : index
    %2 = vector.load %arg2[%c0_1, %c0_2] : memref<128x128xbf16, #tpu.memory_space<vmem>>, vector<128x128xbf16>
    %cst = arith.constant dense<0.000000e+00> : vector<24x128xf32>
    %3 = tpu.matmul %1, %2, %cst {dimension_numbers = #tpu.dot_dimension_numbers<[1], [0], [0], [1], [0, 0, 1, 1], [], []>} : vector<24x128xbf16>, vector<128x128xbf16>, vector<24x128xf32> -> vector<24x128xf32>
    %c0_3 = arith.constant 0 : index
    %c0_4 = arith.constant 0 : index
    %4 = vector.load %arg3[%c0_3, %c0_4] : memref<1x128xf32, #tpu.memory_space<vmem>>, vector<1x128xf32>
    %5 = vector.broadcast %4 : vector<1x128xf32> to vector<24x128xf32>
    %6 = arith.addf %3, %5 : vector<24x128xf32>
    %cst_5 = arith.constant dense<0xFF800000> : vector<24xf32>
    %7 = vector.multi_reduction <maximumf>, %6, %cst_5 [1] : vector<24x128xf32> to vector<24xf32>
    %8 = vector.shape_cast %7 : vector<24xf32> to vector<24x1xf32>
    %9 = vector.broadcast %8 : vector<24x1xf32> to vector<24x128xf32>
    %10 = arith.subf %6, %9 : vector<24x128xf32>
    %11 = math.exp %10 : vector<24x128xf32>
    %cst_6 = arith.constant dense<0.000000e+00> : vector<24xf32>
    %12 = vector.multi_reduction <add>, %11, %cst_6 [1] : vector<24x128xf32> to vector<24xf32>
    %13 = vector.shape_cast %12 : vector<24xf32> to vector<24x1xf32>
    %14 = tpu.reciprocal %13 {approx = true} : vector<24x1xf32> -> vector<24x1xf32>
    %15 = vector.broadcast %14 : vector<24x1xf32> to vector<24x128xf32>
    %16 = arith.mulf %11, %15 : vector<24x128xf32>
    %17 = arith.truncf %16 : vector<24x128xf32> to vector<24x128xbf16>
    %c0_7 = arith.constant 0 : index
    %c0_8 = arith.constant 0 : index
    %18 = vector.load %arg4[%c0_7, %c0_8] : memref<128x128xbf16, #tpu.memory_space<vmem>>, vector<128x128xbf16>
    %cst_9 = arith.constant dense<0.000000e+00> : vector<24x128xf32>
    %19 = tpu.matmul %17, %18, %cst_9 {dimension_numbers = #tpu.dot_dimension_numbers<[1], [0], [0], [1], [0, 0, 1, 1], [], []>} : vector<24x128xbf16>, vector<128x128xbf16>, vector<24x128xf32> -> vector<24x128xf32>
    %c0_10 = arith.constant 0 : index
    %c0_11 = arith.constant 0 : index
    %20 = vector.load %arg5[%c0_10, %c0_11] : memref<24x128xf32, #tpu.memory_space<vmem>>, vector<24x128xf32>
    tpu.vector_store %arg5[%c0_10, %c0_11], %19 {strides = array<i32>} : memref<24x128xf32, #tpu.memory_space<vmem>>, vector<24x128xf32>,
    return
  }
  func.func @transform_0(%arg0: i32) -> (i32, i32) {
    %c0_i32 = arith.constant 0 : i32
    %c0_i32_0 = arith.constant 0 : i32
    return %arg0, %c0_i32 : i32, i32
  }
  func.func @transform_1(%arg0: i32) -> (i32, i32) {
    %c0_i32 = arith.constant 0 : i32
    %c0_i32_0 = arith.constant 0 : i32
    %c0_i32_1 = arith.constant 0 : i32
    return %c0_i32, %c0_i32_0 : i32, i32
  }
  func.func @transform_2(%arg0: i32) -> (i32, i32) {
    %c0_i32 = arith.constant 0 : i32
    %c0_i32_0 = arith.constant 0 : i32
    %c0_i32_1 = arith.constant 0 : i32
    return %c0_i32, %c0_i32_0 : i32, i32
  }
  func.func @transform_3(%arg0: i32) -> (i32, i32) {
    %c0_i32 = arith.constant 0 : i32
    %c0_i32_0 = arith.constant 0 : i32
    %c0_i32_1 = arith.constant 0 : i32
    return %c0_i32, %c0_i32_0 : i32, i32
  }
  func.func @transform_4(%arg0: i32) -> (i32, i32) {
    %c0_i32 = arith.constant 0 : i32
    %c0_i32_0 = arith.constant 0 : i32
    return %arg0, %c0_i32 : i32, i32
  }
}

module attributes {stable_mosaic.version = 11 : i64} {
  func.func @_attn_kernel(%arg0: i32, %arg1: memref<24x128xf32, #tpu.memory_space<vmem>>, %arg2: memref<128x128xbf16, #tpu.memory_space<vmem>>, %arg3: memref<1x128xf32, #tpu.memory_space<vmem>>, %arg4: memref<128x128xbf16, #tpu.memory_space<vmem>>, %arg5: memref<24x128xf32, #tpu.memory_space<vmem>>) attributes {dimension_semantics = [#tpu.dimension_semantics<parallel>], iteration_bounds = array<i64: 2>, scalar_prefetch = 0 : i64, scratch_operands = 0 : i64, tpu.core_type = #tpu.core_type<tc>, window_params = [{transform_indices = @transform_0, window_bounds = array<i64: 24, 128>}, {pipeline_mode = #tpu.pipeline_mode<synchronous>, transform_indices = @transform_1, window_bounds = array<i64: 128, 128>}, {pipeline_mode = #tpu.pipeline_mode<synchronous>, transform_indices = @transform_2, window_bounds = array<i64: 1, 128>}, {pipeline_mode = #tpu.pipeline_mode<synchronous>, transform_indices = @transform_3, window_bounds = array<i64: 128, 128>}, {transform_indices = @transform_4, window_bounds = array<i64: 24, 128>}]} {
    %c0 = arith.constant 0 : index
    %c0_0 = arith.constant 0 : index
    %0 = vector.load %arg1[%c0, %c0_0] : memref<24x128xf32, #tpu.memory_space<vmem>>, vector<24x128xf32>
    %1 = arith.truncf %0 : vector<24x128xf32> to vector<24x128xbf16>
    %c0_1 = arith.constant 0 : index
    %c0_2 = arith.constant 0 : index
    %2 = vector.load %arg2[%c0_1, %c0_2] : memref<128x128xbf16, #tpu.memory_space<vmem>>, vector<128x128xbf16>
    %cst = arith.constant dense<0.000000e+00> : vector<24x128xf32>
    %3 = tpu.matmul %1, %2, %cst {dimension_numbers = #tpu.dot_dimension_numbers<[1], [0], [0], [1], [0, 0, 1, 1], [], []>} : vector<24x128xbf16>, vector<128x128xbf16>, vector<24x128xf32> -> vector<24x128xf32>
    %c0_3 = arith.constant 0 : index
    %c0_4 = arith.constant 0 : index
    %4 = vector.load %arg3[%c0_3, %c0_4] : memref<1x128xf32, #tpu.memory_space<vmem>>, vector<1x128xf32>
    %5 = vector.broadcast %4 : vector<1x128xf32> to vector<24x128xf32>
    %6 = arith.addf %3, %5 : vector<24x128xf32>
    %cst_5 = arith.constant dense<0xFF800000> : vector<24xf32>
    %7 = vector.multi_reduction <maximumf>, %6, %cst_5 [1] : vector<24x128xf32> to vector<24xf32>
    %8 = vector.shape_cast %7 : vector<24xf32> to vector<24x1xf32>
    %9 = vector.broadcast %8 : vector<24x1xf32> to vector<24x128xf32>
    %10 = arith.subf %6, %9 : vector<24x128xf32>
    %11 = math.exp %10 : vector<24x128xf32>
    %cst_6 = arith.constant dense<0.000000e+00> : vector<24xf32>
    %12 = vector.multi_reduction <add>, %11, %cst_6 [1] : vector<24x128xf32> to vector<24xf32>
    %13 = vector.shape_cast %12 : vector<24xf32> to vector<24x1xf32>
    %14 = tpu.reciprocal %13 {approx = true} : vector<24x1xf32> -> vector<24x1xf32>
    %15 = vector.broadcast %14 : vector<24x1xf32> to vector<24x128xf32>
    %16 = arith.mulf %11, %15 : vector<24x128xf32>
    %17 = arith.truncf %16 : vector<24x128xf32> to vector<24x128xbf16>
    %c0_7 = arith.constant 0 : index
    %c0_8 = arith.constant 0 : index
    %18 = vector.load %arg4[%c0_7, %c0_8] : memref<128x128xbf16, #tpu.memory_space<vmem>>, vector<128x128xbf16>
    %cst_9 = arith.constant dense<0.000000e+00> : vector<24x128xf32>
    %19 = tpu.matmul %17, %18, %cst_9 {dimension_numbers = #tpu.dot_dimension_numbers<[1], [0], [0], [1], [0, 0, 1, 1], [], []>} : vector<24x128xbf16>, vector<128x128xbf16>, vector<24x128xf32> -> vector<24x128xf32>
    %c0_10 = arith.constant 0 : index
    %c0_11 = arith.constant 0 : index
    %20 = vector.load %arg5[%c0_10, %c0_11] : memref<24x128xf32, #tpu.memory_space<vmem>>, vector<24x128xf32>
    tpu.vector_store %arg5[%c0_10, %c0_11], %19 {strides = array<i32>} : memref<24x128xf32, #tpu.memory_space<vmem>>, vector<24x128xf32>,
    return
  }
  func.func @transform_0(%arg0: i32) -> (i32, i32) {
    %c0_i32 = arith.constant 0 : i32
    %c0_i32_0 = arith.constant 0 : i32
    return %arg0, %c0_i32 : i32, i32
  }
  func.func @transform_1(%arg0: i32) -> (i32, i32) {
    %c0_i32 = arith.constant 0 : i32
    %c0_i32_0 = arith.constant 0 : i32
    %c0_i32_1 = arith.constant 0 : i32
    return %c0_i32, %c0_i32_0 : i32, i32
  }
  func.func @transform_2(%arg0: i32) -> (i32, i32) {
    %c0_i32 = arith.constant 0 : i32
    %c0_i32_0 = arith.constant 0 : i32
    %c0_i32_1 = arith.constant 0 : i32
    return %c0_i32, %c0_i32_0 : i32, i32
  }
  func.func @transform_3(%arg0: i32) -> (i32, i32) {
    %c0_i32 = arith.constant 0 : i32
    %c0_i32_0 = arith.constant 0 : i32
    %c0_i32_1 = arith.constant 0 : i32
    return %c0_i32, %c0_i32_0 : i32, i32
  }
  func.func @transform_4(%arg0: i32) -> (i32, i32) {
    %c0_i32 = arith.constant 0 : i32
    %c0_i32_0 = arith.constant 0 : i32
    return %arg0, %c0_i32 : i32, i32
  }
}

</mosaic_0001>

<bundles_post_ra>
// kernel: tpu_custom_call.1
= control target key start
LH: loop header
LB: loop body
LE: loop exit
PB: predicated region body
PF: predicated region fallthrough
CT: control target
= control target key end

     0   :  { %9 = vsyncpa [#allocation3], 0  ;;  %s1201_s0 = inlined_call_operand.hbm [shape: f32[48,128], index: 0, kind: input, shape index: {}]   ;;  %s1202_s1 = inlined_call_operand.hbm [shape: bf16[128,128], index: 1, kind: input, shape index: {}]   ;;  %s1203_s2 = inlined_call_operand.vmem [shape: f32[1,128], index: 2, kind: input, shape index: {}]   ;;  %s1204_s3 = inlined_call_operand.hbm [shape: bf16[128,128], index: 3, kind: input, shape index: {}]   ;;  %s1205_s4 = inlined_call_operand.hbm [shape: f32[48,128], index: 4, kind: output, shape index: {}]  }
   0x1   :  { %11 = vsyncpa [#allocation3 + $0x1], 0 }
   0x2   :  { %12 = vsyncpa [#allocation6], 0 }
   0x3   :  { %13 = vsyncpa [#allocation4], 0 }
   0x4   :  { %15 = vsyncpa [#allocation4 + $0x1], 0  ;;  %s1001_s15 = smov 0   ;;  %s1003_s16 = smov 0  }
   0x5   :  { %s1005_s17 = smov 0   ;;  %s1007_s18 = smov 0  }
   0x6 LB: > { %s1022_s19 = sadd.s32 4294967295, %s964_s18   ;;  %s622_s20 = sadd.s32 4294967294, %s964_s18   ;;  %s964_s18 = sphi %s1007_s18, %s1227_s18   ;;  %s960_s17 = sphi %s1005_s17, %s1226_s17   ;;  %s956_s16 = sphi %s1003_s16, %s1225_s16   ;;  %s952_s15 = sphi %s1001_s15, %s1224_s15  }
   0x7   : > { %p41_p0 = scmp.ne.s32.totalorder %s956_s16, %s952_s15  ;;  %p1206_p1 = scmp.eq.s32.totalorder %s1022_s19, 0 }
   0x8   : > { %p134_p3 = scmp.eq.s32.totalorder %s622_s20, 1  ;;  %p623_p5 = scmp.ge.s32.totalorder %s964_s18, 1 }
   0x9   : > { %p1031_p4 = por %p1206_p1, %p41_p0  ;;  %p141_p7 = scmp.lt.s32.totalorder %s964_s18, 3 }
   0xa   : > { %p1036_p6 = por %p134_p3, %p41_p0  ;;  %s966_s24 = smov [#allocation5]  }
   0xb   : > { %s1210_s21 = scalar_select %p1031_p4, 1, 0 }
   0xc   : > { %s1211_s22 = scalar_select %p1036_p6, 1, 0 }
   0xd   : > { %p1041_p8 = pnand %p623_p5, %p141_p7  ;;  %s153_s25 = sshll.u32 %s966_s24, 4  ;;  %s154_s25 = int_to_ptr.vmem [resolvable:$true] %s153_s25 }
   0xe   : > { %s967_s27 = smov [#allocation7]   ;;  %s827_s29 = scalar_lea.vmem %s154_s25, 1024 }
   0xf   : > { %s1212_s23 = scalar_select %p1041_p8, 1, 0 }
  0x10   : > { %p727_p9 = pneg %p1041_p8  ;;  %s169_s28 = sshll.u32 %s967_s27, 4  ;;  %s170_s28 = int_to_ptr.vmem [resolvable:$true] %s169_s28 }
  0x11   : > { %p828_p13 = scmp.ne.s32.totalorder %s154_s25, %s827_s29  ;;  %p835_p5 = scmp.lt.s32.totalorder %s154_s25, %s154_s25 }
  0x12   : > { %p1050_p11 = pnand %p727_p9, %p1206_p1  ;;  %p836_p7 = scmp.lt.s32.totalorder %s827_s29, %s827_s29 }
  0x14   : > { %p818_p12 = pneg %p1050_p11  ;;  %p837_p10 = por %p836_p7, %p835_p5 }
  0x16   : > { %p830_p0 = pnand %p828_p13, %p818_p12 }
  0x18   : > { %p831_p3 = pneg %p830_p0 }
  0x1a   : > { %p838_p9 = pnand %p837_p10, %p831_p3 }
  0x1c   : > { %841 = shalt.err (!%p838_p9)
}
  0x1d   : > { %s968_s30 = smov 64   ;;  %s969_s5 = smov 4  }
  0x1e   : > { %730 = dma.hbm_to_vmem [thread:$0]  (!%p1050_p11), %s1202_s1, 1024, %s154_s25, [#allocation6], %s968_s30, %s968_s30, %s969_s5  }
  0x1f   : > { %s853_s8 = scalar_lea.vmem %s170_s28, 1024  ;;  %p861_p2 = scmp.lt.s32.totalorder %s170_s28, %s170_s28 }
  0x20   : > { %p854_p1 = scmp.ne.s32.totalorder %s170_s28, %s853_s8  ;;  %p862_p6 = scmp.lt.s32.totalorder %s853_s8, %s853_s8 }
  0x22   : > { %p856_p13 = pnand %p854_p1, %p818_p12  ;;  %p863_p5 = por %p862_p6, %p861_p2 }
  0x24   : > { %p857_p0 = pneg %p856_p13 }
  0x26   : > { %p864_p10 = pnand %p863_p5, %p857_p0 }
  0x28   : > { %867 = shalt.err (!%p864_p10)
}
  0x29   : > { %733 = dma.hbm_to_vmem [thread:$0]  (!%p1050_p11), %s1204_s3, 1024, %s170_s28, [#allocation6], %s968_s30, %s968_s30, %s969_s5  }
  0x2a   : > { %s1073_s11 = sadd.s32 1, %s964_s18   ;;  %s28_s12 = sadd.s32 1, %s960_s17 }
  0x2b   : > { %s25_s13 = ssub.s32 %s964_s18, %s1073_s11  ;;  %p35_p1 = scmp.ne.s32.totalorder %s960_s17, %s956_s16 }
  0x2c   : > { %p26_p2 = scmp.eq.s32.totalorder %s25_s13, 0  ;;  %p36_p6 = scmp.eq.s32.totalorder %s964_s18, 0 }
  0x2d   : > { %p1214_p12 = scmp.eq.s32.totalorder %s1022_s19, 1  ;;  %p744_p7 = scmp.lt.s32.totalorder %s964_s18, 2 }
  0x2e   : > { %s1089_s20 = scalar_select %p26_p2, %s960_s17, %s28_s12  }
  0x2f   : > { %p1083_p3 = por %p1214_p12, %p35_p1  ;;  %p37_p9 = por %p36_p6, %p35_p1 }
  0x30   : > { %s183_s24 = sand.u32 1, %s960_s17   ;;  %s651_s26 = smul.u32 384, %s964_s18 }
  0x31   : > { %s1215_s14 = scalar_select %p1083_p3, 1, 0 }
  0x32   : > { %s713_s25 = smul.u32 24, %s183_s24  ;;  %p1093_p11 = pnand %p744_p7, %p37_p9 }
  0x33   : > { %s1100_s30 = scalar_lea.hbm %s1201_s0, %s651_s26  ;;  %s1104_s7 = scalar_lea.sflag [#allocation3], %s183_s24 }
  0x34   : > { %s187_s5 = scalar_lea.vmem [#allocation2], %s713_s25  ;;  %s868_s8 = scalar_lea.hbm %s1100_s30, 384 }
  0x35   : > { %s194_s6 = sshll.u32 %s187_s5, 4  ;;  %p869_p13 = scmp.ne.s32.totalorder %s1100_s30, %s868_s8  ;;  %s1102_s6 = int_to_ptr.vmem [resolvable:$true] %s194_s6 }
  0x36   : > { %p870_p0 = pneg %p1093_p11  ;;  %s873_s12 = scalar_lea.hbm %s1201_s0, 768 }
  0x37   : > { %p874_p1 = scmp.lt.s32.totalorder %s1100_s30, %s1201_s0  ;;  %p875_p2 = scmp.lt.s32.totalorder %s873_s12, %s868_s8 }
  0x38   : > { %p871_p5 = pnand %p870_p0, %p869_p13 }
  0x39   : > { %p876_p6 = por %p875_p2, %p874_p1 }
  0x3a   : > { %p872_p10 = pneg %p871_p5 }
  0x3c   : > { %p877_p12 = pnand %p876_p6, %p872_p10 }
  0x3e   : > { %880 = shalt.err (!%p877_p12)
}
  0x3f   : > { %s881_s24 = scalar_lea.vmem %s1102_s6, 384  ;;  %s970_s25 = smov [#allocation2]  }
  0x40   : > { %p882_p7 = scmp.ne.s32.totalorder %s1102_s6, %s881_s24  ;;  %s886_s28 = sshll.u32 %s970_s25, 4  ;;  %s887_s28 = int_to_ptr.vmem [resolvable:$false] %s886_s28 }
  0x41   : > { %s888_s29 = scalar_lea.vmem %s887_s28, 768  ;;  %p889_p5 = scmp.lt.s32.totalorder %s1102_s6, %s887_s28 }
  0x42   : > { %p884_p9 = pnand %p882_p7, %p870_p0  ;;  %p890_p3 = scmp.lt.s32.totalorder %s888_s29, %s881_s24 }
  0x44   : > { %p885_p13 = pneg %p884_p9  ;;  %p891_p4 = por %p890_p3, %p889_p5 }
  0x46   : > { %p892_p8 = pnand %p891_p4, %p885_p13 }
  0x48   : > { %895 = shalt.err (!%p892_p8)
}
  0x49   : > { %s971_s5 = smov 128   ;;  %s972_s8 = smov 8  }
  0x4a   : > { %737 = dma.hbm_to_vmem [thread:$0]  (!%p1093_p11), %s1100_s30, 384, %s1102_s6, %s1104_s7, %s971_s5, %s971_s5, %s972_s8  }
  0x4b   : > { %p1217_p0 = scmp.ne.s32.totalorder %s1212_s23, 0 }
  0x4c   : > { %s1128_s9 = sand.u32 (!%p1217_p0), 1, %s956_s16   ;;  %p1218_p4 = scmp.ne.s32.totalorder (!%p1217_p0), %s1210_s21, 0 }
  0x4d   : > { %206 = sbr.rel (%p1217_p0) target bundleno = 847 (0x34f), region = 36  ;;  %s209_s12 = scalar_lea.sflag (!%p1217_p0), [#allocation3], %s1128_s9 }
  0x4e   : > { %s714_s10 = smul.u32 (!%p1217_p0), 24, %s1128_s9 }
  0x50   : > { %s1134_s13 = scalar_lea.vmem (!%p1217_p0), [#allocation2], %s714_s10 }
  0x52   : > { %939 = dma.done.wait (%p1218_p4), %s209_s12, 384  }
  0x53   : > { %941 = vsyncadd (%p1218_p4), %s209_s12, 4294966912  ;;  %p1219_p8 = scmp.eq.s32.totalorder %s1022_s19, 0 }
  0x55   : > { %943 = dma.done.wait (%p1219_p8), [#allocation6], 2048   ;;  %p1220_p3 = pmov %p1219_p8 }
  0x56   : > { %v788_v0 = vld [vmem:[#allocation5 + $0x38] sm:$0xff]   ;;  %v789_v1 = vld [vmem:[#allocation5 + $0x30] sm:$0xff]   ;;  %v790_v2 = vld [vmem:[#allocation5 + $0x28] sm:$0xff]   ;;  %s244_s27 = scalar_lea.vmem [#allocation8], %s714_s10  ;;  %s652_s6 = smul.u32 384, %s1022_s19 }
  0x57   : > { %945 = vsyncadd (%p1220_p3), [#allocation6], 4294965248  ;;  %673 = vmatprep.subr.bf16.mxu0 %v788_v0  ;;  %v791_v3 = vld [vmem:[#allocation5 + $0x20] sm:$0xff]   ;;  %v248_v4 = vld [vmem:[%s1134_s13] sm:$0xff]  ;;  %s530_s30 = sshll.u32 %s244_s27, 4  ;;  %s517_s25 = scalar_lea.sflag [#allocation4], %s1128_s9  ;;  %s1153_s30 = int_to_ptr.vmem [resolvable:$true] %s530_s30 }
  0x58   : > { %674 = vmatpush3.bf16.msra.mxu0 %v788_v0  ;;  %v249_v5 = vld [vmem:[%s1134_s13 + $0x8] sm:$0xff]  ;;  %v794_v9 = vld [vmem:[#allocation5 + $0x8] sm:$0xff]   ;;  %v795_v10 = vld [vmem:[#allocation5] sm:$0xff]   ;;  %s1158_s24 = scalar_lea.hbm %s1205_s4, %s652_s6  ;;  %s896_s28 = scalar_lea.vmem %s1153_s30, 384 }
  0x59   : > { %675 = vmatprep.subr.bf16.mxu0 %v789_v1  ;;  %v251_v6 = vpack.c.bf16 %v249_v5, %v248_v4  ;;  %v792_v7 = vld [vmem:[#allocation5 + $0x18] sm:$0xff]   ;;  %v793_v8 = vld [vmem:[#allocation5 + $0x10] sm:$0xff]   ;;  %v798_v23 = vld [vmem:[#allocation7 + $0x28] sm:$0xff]   ;;  %p897_p11 = scmp.ne.s32.totalorder %s1153_s30, %s896_s28  ;;  %p1221_p10 = scmp.ne.s32.totalorder %s1215_s14, 0 }
  0x5a   : > { %v250_v11 = vld [vmem:[%s1134_s13 + $0x10] sm:$0xff]  ;;  %v631_v13 = vld [vmem:[%s1203_s2] ss:$0 sm:$0xff]  ;;  %v802_v39 = vld [vmem:[#allocation7 + $0x8] sm:$0xff]   ;;  %s973_s19 = smov [#allocation8]  }
  0x5b   : > { %689 = vmatprep.mubr.bf16.mxu0 %v251_v6  ;;  %v252_v12 = vpack.c.bf16 %v250_v11, %v250_v11  ;;  %v796_v21 = vld [vmem:[#allocation7 + $0x38] sm:$0xff]   ;;  %v797_v22 = vld [vmem:[#allocation7 + $0x30] sm:$0xff]   ;;  %v799_v36 = vld [vmem:[#allocation7 + $0x20] sm:$0xff]   ;;  %p898_p1 = pnand %p897_p11, %p1221_p10  ;;  %s900_s29 = sshll.u32 %s973_s19, 4  ;;  %s901_s29 = int_to_ptr.vmem [resolvable:$false] %s900_s29 }
  0x5c   : > { %676 = vmatpush3.bf16.msra.mxu0 %v789_v1  ;;  %693 = vmatprep.subr.bf16.mxu1 %v796_v21  ;;  %v800_v37 = vld [vmem:[#allocation7 + $0x18] sm:$0xff]   ;;  %v801_v38 = vld [vmem:[#allocation7 + $0x10] sm:$0xff]   ;;  %v803_v40 = vld [vmem:[#allocation7] sm:$0xff]   ;;  %s902_s5 = scalar_lea.vmem %s901_s29, 768  ;;  %p903_p6 = scmp.lt.s32.totalorder %s1153_s30, %s901_s29 }
  0x5d   : > { %677 = vmatprep.subr.bf16.mxu0 %v790_v2  ;;  %694 = vmatpush3.bf16.msra.mxu1 %v796_v21  ;;  %p899_p2 = pneg %p898_p1  ;;  %p904_p12 = scmp.lt.s32.totalorder %s902_s5, %s896_s28 }
  0x5e   : > { %695 = vmatprep.subr.bf16.mxu1 %v797_v22 }
  0x5f   : > { %p905_p7 = por %p904_p12, %p903_p6 }
  0x60   : > { %678 = vmatpush3.bf16.msra.mxu0 %v790_v2 }
  0x61   : > { %679 = vmatprep.subr.bf16.mxu0 %v791_v3  ;;  %696 = vmatpush3.bf16.msra.mxu1 %v797_v22  ;;  %p906_p9 = pnand %p905_p7, %p899_p2 }
  0x62   : > { %697 = vmatprep.subr.bf16.mxu1 %v798_v23 }
  0x64   : > { %680 = vmatpush3.bf16.msra.mxu0 %v791_v3 }
  0x65   : > { %681 = vmatprep.subr.bf16.mxu0 %v792_v7  ;;  %698 = vmatpush3.bf16.msra.mxu1 %v798_v23 }
  0x66   : > { %699 = vmatprep.subr.bf16.mxu1 %v799_v36 }
  0x68   : > { %682 = vmatpush3.bf16.msra.mxu0 %v792_v7 }
  0x69   : > { %683 = vmatprep.subr.bf16.mxu0 %v793_v8  ;;  %700 = vmatpush3.bf16.msra.mxu1 %v799_v36 }
  0x6a   : > { %701 = vmatprep.subr.bf16.mxu1 %v800_v37 }
  0x6c   : > { %684 = vmatpush3.bf16.msra.mxu0 %v793_v8 }
  0x6d   : > { %685 = vmatprep.subr.bf16.mxu0 %v794_v9  ;;  %702 = vmatpush3.bf16.msra.mxu1 %v800_v37 }
  0x6e   : > { %703 = vmatprep.subr.bf16.mxu1 %v801_v38 }
  0x70   : > { %686 = vmatpush3.bf16.msra.mxu0 %v794_v9 }
  0x71   : > { %687 = vmatprep.subr.bf16.mxu0 %v795_v10  ;;  %704 = vmatpush3.bf16.msra.mxu1 %v801_v38 }
  0x72   : > { %705 = vmatprep.subr.bf16.mxu1 %v802_v39 }
  0x74   : > { %688 = vmatpush3.bf16.msra.mxu0 %v795_v10 }
  0x75   : > { %706 = vmatpush3.bf16.msra.mxu1 %v802_v39 }
  0x76   : > { %707 = vmatprep.subr.bf16.mxu1 %v803_v40 }
  0x77   : > { %690 = vmatmul.mubr.bf16.vlgmr.msra.gmra.mxu0 %v252_v12 }
  0x79   : > { %708 = vmatpush3.bf16.msra.mxu1 %v803_v40 }
 0x137   : > { %v691_v14 = vpop.f32.mrf.mxu0 }
 0x138   : > { %v367_v15 = vadd.f32 %v691_v14, %v631_v13 }
 0x139   : > { %v358_v16 = vpop.f32.mrf.mxu0 }
 0x13a   : > { %v359_v17 = vadd.f32 %v631_v13, %v358_v16  ;;  %376 = vmax.xlane.f32.xlu1 %v367_v15 }
 0x13b   : > { %v692_v18 = vpop.f32.mrf.mxu0 }
 0x13c   : > { %372 = vmax.xlane.f32.xlu0 %v359_v17 }
 0x13d   : > { %v361_v19 = vpop.f32.mrf.mxu0 }
 0x13e   : > { %v362_v20 = vadd.f32 %v631_v13, %v361_v19 }
 0x140   : > { %374 = vmax.xlane.f32.xlu0 %v362_v20 }
 0x1c3   : > { %v377_v24 = vpop.xlane.xlu1 %376 }
 0x1c4   : > { %v380_v25 = vsub.f32 %v367_v15, %v377_v24 }
 0x1c5   : > { %v373_v26 = vpop.xlane.xlu0 %372 }
 0x1c6   : > { %v378_v27 = vsub.f32 %v359_v17, %v373_v26  ;;  %v385_v29 = vmul.f32 1.442695, %v380_v25 }
 0x1c8   : > { %v381_v28 = vmul.f32 1.442695, %v378_v27 }
 0x1c9   : > { %v375_v30 = vpop.xlane.xlu0 %374 }
 0x1ca   : > { %804 = vpow2.f32 %v381_v28  ;;  %v379_v31 = vsub.f32 %v362_v20, %v375_v30 }
 0x1cb   : > { %806 = vpow2.f32 %v385_v29 }
 0x1cc   : > { %v383_v32 = vmul.f32 1.442695, %v379_v31 }
 0x1ce   : > { %808 = vpow2.f32 %v383_v32 }
 0x1d7   : > { %v805_v33 = vpop.eup %804 }
 0x1d8   : > { %387 = vadd.xlane.f32.xlu1 %v805_v33  ;;  %v807_v34 = vpop.eup %806 }
 0x1db   : > { %v809_v35 = vpop.eup %808 }
 0x1dc   : > { %391 = vadd.xlane.f32.xlu1 %v807_v34  ;;  %389 = vadd.xlane.f32.xlu0 %v809_v35 }
 0x261   : > { %v388_v41 = vpop.xlane.xlu1 %387 }
 0x262   : > { %810 = vrcp.f32 %v388_v41 }
 0x265   : > { %v392_v42 = vpop.xlane.xlu1 %391  ;;  %v390_v43 = vpop.xlane.xlu0 %389 }
 0x266   : > { %812 = vrcp.f32 %v392_v42 }
 0x267   : > { %814 = vrcp.f32 %v390_v43 }
 0x26f   : > { %v811_v44 = vpop.eup %810 }
 0x270   : > { %v396_v48 = vmul.f32 %v811_v44, %v805_v33 }
 0x273   : > { %v813_v45 = vpop.eup %812 }
 0x274   : > { %v815_v46 = vpop.eup %814  ;;  %v398_v47 = vmul.f32 %v813_v45, %v807_v34 }
 0x275   : > { %v397_v49 = vmul.f32 %v815_v46, %v809_v35 }
 0x276   : > { %v400_v50 = vpack.c.bf16 %v398_v47, %v398_v47 }
 0x277   : > { %v399_v51 = vpack.c.bf16 %v397_v49, %v396_v48 }
 0x279   : > { %709 = vmatprep.mubr.bf16.mxu1 %v399_v51 }
 0x27a   : > { %710 = vmatmul.mubr.bf16.vlgmr.msra.gmra.mxu1 %v400_v50 }
 0x33a   : > { %v711_v52 = vpop.f32.mrf.mxu1 }
 0x33b   : > { %515 = vst [vmem:[%s244_s27 + $0x10] sm:$0xff] %v711_v52 }
 0x33c   : > { %v499_v53 = vpop.f32.mrf.mxu1 }
 0x33d   : > { %513 = vst [vmem:[%s244_s27] sm:$0xff] %v499_v53 }
 0x33e   : > { %v712_v54 = vpop.f32.mrf.mxu1 }
 0x340   : > { %v502_v55 = vpop.f32.mrf.mxu1 }
 0x341   : > { %514 = vst [vmem:[%s244_s27 + $0x8] sm:$0xff] %v502_v55 }
 0x342   : > { %909 = shalt.err (!%p906_p9)
}
 0x343   : > { %s910_s8 = scalar_lea.hbm %s1158_s24, 384  ;;  %s914_s13 = scalar_lea.hbm %s1205_s4, 768 }
 0x344   : > { %p911_p13 = scmp.ne.s32.totalorder %s1158_s24, %s910_s8  ;;  %p915_p4 = scmp.lt.s32.totalorder %s1158_s24, %s1205_s4 }
 0x345   : > { %p916_p8 = scmp.lt.s32.totalorder %s914_s13, %s910_s8 }
 0x346   : > { %p912_p5 = pnand %p911_p13, %p1221_p10 }
 0x347   : > { %p917_p3 = por %p916_p8, %p915_p4 }
 0x348   : > { %p913_p0 = pneg %p912_p5 }
 0x34a   : > { %p918_p11 = pnand %p917_p3, %p913_p0 }
 0x34c   : > { %921 = shalt.err (!%p918_p11)
}
 0x34d   : > { %s974_s27 = smov 128   ;;  %s975_s6 = smov 8  }
 0x34e   : > { %725 = dma.vmem_to_hbm [thread:$0]  (%p1221_p10), %s1153_s30, 384, %s1158_s24, %s517_s25, %s974_s27, %s974_s27, %s975_s6  }
 0x34f PF: > { %s545_s7 = sand.u32 1, %s952_s15   ;;  %p1222_p1 = scmp.ne.s32.totalorder %s1211_s22, 0 }
 0x350   : > { %p1223_p2 = scmp.ge.s32.totalorder %s964_s18, 2  ;;  %s546_s26 = scalar_lea.sflag [#allocation4], %s545_s7 }
 0x352   : > { %p739_p6 = pnand %p1223_p2, %p1222_p1 }
 0x354   : > { %p740_p12 = pneg %p739_p6 }
 0x356   : > { %947 = dma.done.wait (%p740_p12), %s546_s26, 384  }
 0x357   : > { %949 = vsyncadd (%p740_p12), %s546_s26, 4294966912  ;;  %p18_p7 = scmp.ge.s32.totalorder %s1073_s11, 4   ;;  %s1224_s15 = smov %s956_s16 }
 0x358   : > { %s1225_s16 = smov %s960_s17  ;;  %s1226_s17 = smov %s1089_s20 }
 0x359   : > { %s1227_s18 = smov %s1073_s11  ;;  %20 = sbr.rel (!%p18_p7) target bundleno = 6 (0x6), region = 89 }
 0x35e   :  { %551 = vsyncpa [#allocation3], 1 }
 0x35f   :  { %553 = vsyncpa [#allocation3 + $0x1], 1 }
 0x360   :  { %554 = vsyncpa [#allocation6], 1 }
 0x361   :  { %555 = vsyncpa [#allocation4], 1 }
 0x362   :  { %557 = vsyncpa [#allocation4 + $0x1], 1 }

// kernel: tpu_custom_call.1
= control target key start
LH: loop header
LB: loop body
LE: loop exit
PB: predicated region body
PF: predicated region fallthrough
CT: control target
= control target key end

     0   :  { %9 = vsyncpa [#allocation3], 0  ;;  %s1201_s0 = inlined_call_operand.hbm [shape: f32[48,128], index: 0, kind: input, shape index: {}]   ;;  %s1202_s1 = inlined_call_operand.hbm [shape: bf16[128,128], index: 1, kind: input, shape index: {}]   ;;  %s1203_s2 = inlined_call_operand.vmem [shape: f32[1,128], index: 2, kind: input, shape index: {}]   ;;  %s1204_s3 = inlined_call_operand.hbm [shape: bf16[128,128], index: 3, kind: input, shape index: {}]   ;;  %s1205_s4 = inlined_call_operand.hbm [shape: f32[48,128], index: 4, kind: output, shape index: {}]  }
   0x1   :  { %11 = vsyncpa [#allocation3 + $0x1], 0 }
   0x2   :  { %12 = vsyncpa [#allocation6], 0 }
   0x3   :  { %13 = vsyncpa [#allocation4], 0 }
   0x4   :  { %15 = vsyncpa [#allocation4 + $0x1], 0  ;;  %s1001_s15 = smov 0   ;;  %s1003_s16 = smov 0  }
   0x5   :  { %s1005_s17 = smov 0   ;;  %s1007_s18 = smov 0  }
   0x6 LB: > { %s1022_s19 = sadd.s32 4294967295, %s964_s18   ;;  %s622_s20 = sadd.s32 4294967294, %s964_s18   ;;  %s964_s18 = sphi %s1007_s18, %s1227_s18   ;;  %s960_s17 = sphi %s1005_s17, %s1226_s17   ;;  %s956_s16 = sphi %s1003_s16, %s1225_s16   ;;  %s952_s15 = sphi %s1001_s15, %s1224_s15  }
   0x7   : > { %p41_p0 = scmp.ne.s32.totalorder %s956_s16, %s952_s15  ;;  %p1206_p1 = scmp.eq.s32.totalorder %s1022_s19, 0 }
   0x8   : > { %p134_p3 = scmp.eq.s32.totalorder %s622_s20, 1  ;;  %p623_p5 = scmp.ge.s32.totalorder %s964_s18, 1 }
   0x9   : > { %p1031_p4 = por %p1206_p1, %p41_p0  ;;  %p141_p7 = scmp.lt.s32.totalorder %s964_s18, 3 }
   0xa   : > { %p1036_p6 = por %p134_p3, %p41_p0  ;;  %s966_s24 = smov [#allocation5]  }
   0xb   : > { %s1210_s21 = scalar_select %p1031_p4, 1, 0 }
   0xc   : > { %s1211_s22 = scalar_select %p1036_p6, 1, 0 }
   0xd   : > { %p1041_p8 = pnand %p623_p5, %p141_p7  ;;  %s153_s25 = sshll.u32 %s966_s24, 4  ;;  %s154_s25 = int_to_ptr.vmem [resolvable:$true] %s153_s25 }
   0xe   : > { %s967_s27 = smov [#allocation7]   ;;  %s827_s29 = scalar_lea.vmem %s154_s25, 1024 }
   0xf   : > { %s1212_s23 = scalar_select %p1041_p8, 1, 0 }
  0x10   : > { %p727_p9 = pneg %p1041_p8  ;;  %s169_s28 = sshll.u32 %s967_s27, 4  ;;  %s170_s28 = int_to_ptr.vmem [resolvable:$true] %s169_s28 }
  0x11   : > { %p828_p13 = scmp.ne.s32.totalorder %s154_s25, %s827_s29  ;;  %p835_p5 = scmp.lt.s32.totalorder %s154_s25, %s154_s25 }
  0x12   : > { %p1050_p11 = pnand %p727_p9, %p1206_p1  ;;  %p836_p7 = scmp.lt.s32.totalorder %s827_s29, %s827_s29 }
  0x14   : > { %p818_p12 = pneg %p1050_p11  ;;  %p837_p10 = por %p836_p7, %p835_p5 }
  0x16   : > { %p830_p0 = pnand %p828_p13, %p818_p12 }
  0x18   : > { %p831_p3 = pneg %p830_p0 }
  0x1a   : > { %p838_p9 = pnand %p837_p10, %p831_p3 }
  0x1c   : > { %841 = shalt.err (!%p838_p9)
}
  0x1d   : > { %s968_s30 = smov 64   ;;  %s969_s5 = smov 4  }
  0x1e   : > { %730 = dma.hbm_to_vmem [thread:$0]  (!%p1050_p11), %s1202_s1, 1024, %s154_s25, [#allocation6], %s968_s30, %s968_s30, %s969_s5  }
  0x1f   : > { %s853_s8 = scalar_lea.vmem %s170_s28, 1024  ;;  %p861_p2 = scmp.lt.s32.totalorder %s170_s28, %s170_s28 }
  0x20   : > { %p854_p1 = scmp.ne.s32.totalorder %s170_s28, %s853_s8  ;;  %p862_p6 = scmp.lt.s32.totalorder %s853_s8, %s853_s8 }
  0x22   : > { %p856_p13 = pnand %p854_p1, %p818_p12  ;;  %p863_p5 = por %p862_p6, %p861_p2 }
  0x24   : > { %p857_p0 = pneg %p856_p13 }
  0x26   : > { %p864_p10 = pnand %p863_p5, %p857_p0 }
  0x28   : > { %867 = shalt.err (!%p864_p10)
}
  0x29   : > { %733 = dma.hbm_to_vmem [thread:$0]  (!%p1050_p11), %s1204_s3, 1024, %s170_s28, [#allocation6], %s968_s30, %s968_s30, %s969_s5  }
  0x2a   : > { %s1073_s11 = sadd.s32 1, %s964_s18   ;;  %s28_s12 = sadd.s32 1, %s960_s17 }
  0x2b   : > { %s25_s13 = ssub.s32 %s964_s18, %s1073_s11  ;;  %p35_p1 = scmp.ne.s32.totalorder %s960_s17, %s956_s16 }
  0x2c   : > { %p26_p2 = scmp.eq.s32.totalorder %s25_s13, 0  ;;  %p36_p6 = scmp.eq.s32.totalorder %s964_s18, 0 }
  0x2d   : > { %p1214_p12 = scmp.eq.s32.totalorder %s1022_s19, 1  ;;  %p744_p7 = scmp.lt.s32.totalorder %s964_s18, 2 }
  0x2e   : > { %s1089_s20 = scalar_select %p26_p2, %s960_s17, %s28_s12  }
  0x2f   : > { %p1083_p3 = por %p1214_p12, %p35_p1  ;;  %p37_p9 = por %p36_p6, %p35_p1 }
  0x30   : > { %s183_s24 = sand.u32 1, %s960_s17   ;;  %s651_s26 = smul.u32 384, %s964_s18 }
  0x31   : > { %s1215_s14 = scalar_select %p1083_p3, 1, 0 }
  0x32   : > { %s713_s25 = smul.u32 24, %s183_s24  ;;  %p1093_p11 = pnand %p744_p7, %p37_p9 }
  0x33   : > { %s1100_s30 = scalar_lea.hbm %s1201_s0, %s651_s26  ;;  %s1104_s7 = scalar_lea.sflag [#allocation3], %s183_s24 }
  0x34   : > { %s187_s5 = scalar_lea.vmem [#allocation2], %s713_s25  ;;  %s868_s8 = scalar_lea.hbm %s1100_s30, 384 }
  0x35   : > { %s194_s6 = sshll.u32 %s187_s5, 4  ;;  %p869_p13 = scmp.ne.s32.totalorder %s1100_s30, %s868_s8  ;;  %s1102_s6 = int_to_ptr.vmem [resolvable:$true] %s194_s6 }
  0x36   : > { %p870_p0 = pneg %p1093_p11  ;;  %s873_s12 = scalar_lea.hbm %s1201_s0, 768 }
  0x37   : > { %p874_p1 = scmp.lt.s32.totalorder %s1100_s30, %s1201_s0  ;;  %p875_p2 = scmp.lt.s32.totalorder %s873_s12, %s868_s8 }
  0x38   : > { %p871_p5 = pnand %p870_p0, %p869_p13 }
  0x39   : > { %p876_p6 = por %p875_p2, %p874_p1 }
  0x3a   : > { %p872_p10 = pneg %p871_p5 }
  0x3c   : > { %p877_p12 = pnand %p876_p6, %p872_p10 }
  0x3e   : > { %880 = shalt.err (!%p877_p12)
}
  0x3f   : > { %s881_s24 = scalar_lea.vmem %s1102_s6, 384  ;;  %s970_s25 = smov [#allocation2]  }
  0x40   : > { %p882_p7 = scmp.ne.s32.totalorder %s1102_s6, %s881_s24  ;;  %s886_s28 = sshll.u32 %s970_s25, 4  ;;  %s887_s28 = int_to_ptr.vmem [resolvable:$false] %s886_s28 }
  0x41   : > { %s888_s29 = scalar_lea.vmem %s887_s28, 768  ;;  %p889_p5 = scmp.lt.s32.totalorder %s1102_s6, %s887_s28 }
  0x42   : > { %p884_p9 = pnand %p882_p7, %p870_p0  ;;  %p890_p3 = scmp.lt.s32.totalorder %s888_s29, %s881_s24 }
  0x44   : > { %p885_p13 = pneg %p884_p9  ;;  %p891_p4 = por %p890_p3, %p889_p5 }
  0x46   : > { %p892_p8 = pnand %p891_p4, %p885_p13 }
  0x48   : > { %895 = shalt.err (!%p892_p8)
}
  0x49   : > { %s971_s5 = smov 128   ;;  %s972_s8 = smov 8  }
  0x4a   : > { %737 = dma.hbm_to_vmem [thread:$0]  (!%p1093_p11), %s1100_s30, 384, %s1102_s6, %s1104_s7, %s971_s5, %s971_s5, %s972_s8  }
  0x4b   : > { %p1217_p0 = scmp.ne.s32.totalorder %s1212_s23, 0 }
  0x4c   : > { %s1128_s9 = sand.u32 (!%p1217_p0), 1, %s956_s16   ;;  %p1218_p4 = scmp.ne.s32.totalorder (!%p1217_p0), %s1210_s21, 0 }
  0x4d   : > { %206 = sbr.rel (%p1217_p0) target bundleno = 847 (0x34f), region = 36  ;;  %s209_s12 = scalar_lea.sflag (!%p1217_p0), [#allocation3], %s1128_s9 }
  0x4e   : > { %s714_s10 = smul.u32 (!%p1217_p0), 24, %s1128_s9 }
  0x50   : > { %s1134_s13 = scalar_lea.vmem (!%p1217_p0), [#allocation2], %s714_s10 }
  0x52   : > { %939 = dma.done.wait (%p1218_p4), %s209_s12, 384  }
  0x53   : > { %941 = vsyncadd (%p1218_p4), %s209_s12, 4294966912  ;;  %p1219_p8 = scmp.eq.s32.totalorder %s1022_s19, 0 }
  0x55   : > { %943 = dma.done.wait (%p1219_p8), [#allocation6], 2048   ;;  %p1220_p3 = pmov %p1219_p8 }
  0x56   : > { %v788_v0 = vld [vmem:[#allocation5 + $0x38] sm:$0xff]   ;;  %v789_v1 = vld [vmem:[#allocation5 + $0x30] sm:$0xff]   ;;  %v790_v2 = vld [vmem:[#allocation5 + $0x28] sm:$0xff]   ;;  %s244_s27 = scalar_lea.vmem [#allocation8], %s714_s10  ;;  %s652_s6 = smul.u32 384, %s1022_s19 }
  0x57   : > { %945 = vsyncadd (%p1220_p3), [#allocation6], 4294965248  ;;  %673 = vmatprep.subr.bf16.mxu0 %v788_v0  ;;  %v791_v3 = vld [vmem:[#allocation5 + $0x20] sm:$0xff]   ;;  %v248_v4 = vld [vmem:[%s1134_s13] sm:$0xff]  ;;  %s530_s30 = sshll.u32 %s244_s27, 4  ;;  %s517_s25 = scalar_lea.sflag [#allocation4], %s1128_s9  ;;  %s1153_s30 = int_to_ptr.vmem [resolvable:$true] %s530_s30 }
  0x58   : > { %674 = vmatpush3.bf16.msra.mxu0 %v788_v0  ;;  %v249_v5 = vld [vmem:[%s1134_s13 + $0x8] sm:$0xff]  ;;  %v794_v9 = vld [vmem:[#allocation5 + $0x8] sm:$0xff]   ;;  %v795_v10 = vld [vmem:[#allocation5] sm:$0xff]   ;;  %s1158_s24 = scalar_lea.hbm %s1205_s4, %s652_s6  ;;  %s896_s28 = scalar_lea.vmem %s1153_s30, 384 }
  0x59   : > { %675 = vmatprep.subr.bf16.mxu0 %v789_v1  ;;  %v251_v6 = vpack.c.bf16 %v249_v5, %v248_v4  ;;  %v792_v7 = vld [vmem:[#allocation5 + $0x18] sm:$0xff]   ;;  %v793_v8 = vld [vmem:[#allocation5 + $0x10] sm:$0xff]   ;;  %v798_v23 = vld [vmem:[#allocation7 + $0x28] sm:$0xff]   ;;  %p897_p11 = scmp.ne.s32.totalorder %s1153_s30, %s896_s28  ;;  %p1221_p10 = scmp.ne.s32.totalorder %s1215_s14, 0 }
  0x5a   : > { %v250_v11 = vld [vmem:[%s1134_s13 + $0x10] sm:$0xff]  ;;  %v631_v13 = vld [vmem:[%s1203_s2] ss:$0 sm:$0xff]  ;;  %v802_v39 = vld [vmem:[#allocation7 + $0x8] sm:$0xff]   ;;  %s973_s19 = smov [#allocation8]  }
  0x5b   : > { %689 = vmatprep.mubr.bf16.mxu0 %v251_v6  ;;  %v252_v12 = vpack.c.bf16 %v250_v11, %v250_v11  ;;  %v796_v21 = vld [vmem:[#allocation7 + $0x38] sm:$0xff]   ;;  %v797_v22 = vld [vmem:[#allocation7 + $0x30] sm:$0xff]   ;;  %v799_v36 = vld [vmem:[#allocation7 + $0x20] sm:$0xff]   ;;  %p898_p1 = pnand %p897_p11, %p1221_p10  ;;  %s900_s29 = sshll.u32 %s973_s19, 4  ;;  %s901_s29 = int_to_ptr.vmem [resolvable:$false] %s900_s29 }
  0x5c   : > { %676 = vmatpush3.bf16.msra.mxu0 %v789_v1  ;;  %693 = vmatprep.subr.bf16.mxu1 %v796_v21  ;;  %v800_v37 = vld [vmem:[#allocation7 + $0x18] sm:$0xff]   ;;  %v801_v38 = vld [vmem:[#allocation7 + $0x10] sm:$0xff]   ;;  %v803_v40 = vld [vmem:[#allocation7] sm:$0xff]   ;;  %s902_s5 = scalar_lea.vmem %s901_s29, 768  ;;  %p903_p6 = scmp.lt.s32.totalorder %s1153_s30, %s901_s29 }
  0x5d   : > { %677 = vmatprep.subr.bf16.mxu0 %v790_v2  ;;  %694 = vmatpush3.bf16.msra.mxu1 %v796_v21  ;;  %p899_p2 = pneg %p898_p1  ;;  %p904_p12 = scmp.lt.s32.totalorder %s902_s5, %s896_s28 }
  0x5e   : > { %695 = vmatprep.subr.bf16.mxu1 %v797_v22 }
  0x5f   : > { %p905_p7 = por %p904_p12, %p903_p6 }
  0x60   : > { %678 = vmatpush3.bf16.msra.mxu0 %v790_v2 }
  0x61   : > { %679 = vmatprep.subr.bf16.mxu0 %v791_v3  ;;  %696 = vmatpush3.bf16.msra.mxu1 %v797_v22  ;;  %p906_p9 = pnand %p905_p7, %p899_p2 }
  0x62   : > { %697 = vmatprep.subr.bf16.mxu1 %v798_v23 }
  0x64   : > { %680 = vmatpush3.bf16.msra.mxu0 %v791_v3 }
  0x65   : > { %681 = vmatprep.subr.bf16.mxu0 %v792_v7  ;;  %698 = vmatpush3.bf16.msra.mxu1 %v798_v23 }
  0x66   : > { %699 = vmatprep.subr.bf16.mxu1 %v799_v36 }
  0x68   : > { %682 = vmatpush3.bf16.msra.mxu0 %v792_v7 }
  0x69   : > { %683 = vmatprep.subr.bf16.mxu0 %v793_v8  ;;  %700 = vmatpush3.bf16.msra.mxu1 %v799_v36 }
  0x6a   : > { %701 = vmatprep.subr.bf16.mxu1 %v800_v37 }
  0x6c   : > { %684 = vmatpush3.bf16.msra.mxu0 %v793_v8 }
  0x6d   : > { %685 = vmatprep.subr.bf16.mxu0 %v794_v9  ;;  %702 = vmatpush3.bf16.msra.mxu1 %v800_v37 }
  0x6e   : > { %703 = vmatprep.subr.bf16.mxu1 %v801_v38 }
  0x70   : > { %686 = vmatpush3.bf16.msra.mxu0 %v794_v9 }
  0x71   : > { %687 = vmatprep.subr.bf16.mxu0 %v795_v10  ;;  %704 = vmatpush3.bf16.msra.mxu1 %v801_v38 }
  0x72   : > { %705 = vmatprep.subr.bf16.mxu1 %v802_v39 }
  0x74   : > { %688 = vmatpush3.bf16.msra.mxu0 %v795_v10 }
  0x75   : > { %706 = vmatpush3.bf16.msra.mxu1 %v802_v39 }
  0x76   : > { %707 = vmatprep.subr.bf16.mxu1 %v803_v40 }
  0x77   : > { %690 = vmatmul.mubr.bf16.vlgmr.msra.gmra.mxu0 %v252_v12 }
  0x79   : > { %708 = vmatpush3.bf16.msra.mxu1 %v803_v40 }
 0x137   : > { %v691_v14 = vpop.f32.mrf.mxu0 }
 0x138   : > { %v367_v15 = vadd.f32 %v691_v14, %v631_v13 }
 0x139   : > { %v358_v16 = vpop.f32.mrf.mxu0 }
 0x13a   : > { %v359_v17 = vadd.f32 %v631_v13, %v358_v16  ;;  %376 = vmax.xlane.f32.xlu1 %v367_v15 }
 0x13b   : > { %v692_v18 = vpop.f32.mrf.mxu0 }
 0x13c   : > { %372 = vmax.xlane.f32.xlu0 %v359_v17 }
 0x13d   : > { %v361_v19 = vpop.f32.mrf.mxu0 }
 0x13e   : > { %v362_v20 = vadd.f32 %v631_v13, %v361_v19 }
 0x140   : > { %374 = vmax.xlane.f32.xlu0 %v362_v20 }
 0x1c3   : > { %v377_v24 = vpop.xlane.xlu1 %376 }
 0x1c4   : > { %v380_v25 = vsub.f32 %v367_v15, %v377_v24 }
 0x1c5   : > { %v373_v26 = vpop.xlane.xlu0 %372 }
 0x1c6   : > { %v378_v27 = vsub.f32 %v359_v17, %v373_v26  ;;  %v385_v29 = vmul.f32 1.442695, %v380_v25 }
 0x1c8   : > { %v381_v28 = vmul.f32 1.442695, %v378_v27 }
 0x1c9   : > { %v375_v30 = vpop.xlane.xlu0 %374 }
 0x1ca   : > { %804 = vpow2.f32 %v381_v28  ;;  %v379_v31 = vsub.f32 %v362_v20, %v375_v30 }
 0x1cb   : > { %806 = vpow2.f32 %v385_v29 }
 0x1cc   : > { %v383_v32 = vmul.f32 1.442695, %v379_v31 }
 0x1ce   : > { %808 = vpow2.f32 %v383_v32 }
 0x1d7   : > { %v805_v33 = vpop.eup %804 }
 0x1d8   : > { %387 = vadd.xlane.f32.xlu1 %v805_v33  ;;  %v807_v34 = vpop.eup %806 }
 0x1db   : > { %v809_v35 = vpop.eup %808 }
 0x1dc   : > { %391 = vadd.xlane.f32.xlu1 %v807_v34  ;;  %389 = vadd.xlane.f32.xlu0 %v809_v35 }
 0x261   : > { %v388_v41 = vpop.xlane.xlu1 %387 }
 0x262   : > { %810 = vrcp.f32 %v388_v41 }
 0x265   : > { %v392_v42 = vpop.xlane.xlu1 %391  ;;  %v390_v43 = vpop.xlane.xlu0 %389 }
 0x266   : > { %812 = vrcp.f32 %v392_v42 }
 0x267   : > { %814 = vrcp.f32 %v390_v43 }
 0x26f   : > { %v811_v44 = vpop.eup %810 }
 0x270   : > { %v396_v48 = vmul.f32 %v811_v44, %v805_v33 }
 0x273   : > { %v813_v45 = vpop.eup %812 }
 0x274   : > { %v815_v46 = vpop.eup %814  ;;  %v398_v47 = vmul.f32 %v813_v45, %v807_v34 }
 0x275   : > { %v397_v49 = vmul.f32 %v815_v46, %v809_v35 }
 0x276   : > { %v400_v50 = vpack.c.bf16 %v398_v47, %v398_v47 }
 0x277   : > { %v399_v51 = vpack.c.bf16 %v397_v49, %v396_v48 }
 0x279   : > { %709 = vmatprep.mubr.bf16.mxu1 %v399_v51 }
 0x27a   : > { %710 = vmatmul.mubr.bf16.vlgmr.msra.gmra.mxu1 %v400_v50 }
 0x33a   : > { %v711_v52 = vpop.f32.mrf.mxu1 }
 0x33b   : > { %515 = vst [vmem:[%s244_s27 + $0x10] sm:$0xff] %v711_v52 }
 0x33c   : > { %v499_v53 = vpop.f32.mrf.mxu1 }
 0x33d   : > { %513 = vst [vmem:[%s244_s27] sm:$0xff] %v499_v53 }
 0x33e   : > { %v712_v54 = vpop.f32.mrf.mxu1 }
 0x340   : > { %v502_v55 = vpop.f32.mrf.mxu1 }
 0x341   : > { %514 = vst [vmem:[%s244_s27 + $0x8] sm:$0xff] %v502_v55 }
 0x342   : > { %909 = shalt.err (!%p906_p9)
}
 0x343   : > { %s910_s8 = scalar_lea.hbm %s1158_s24, 384  ;;  %s914_s13 = scalar_lea.hbm %s1205_s4, 768 }
 0x344   : > { %p911_p13 = scmp.ne.s32.totalorder %s1158_s24, %s910_s8  ;;  %p915_p4 = scmp.lt.s32.totalorder %s1158_s24, %s1205_s4 }
 0x345   : > { %p916_p8 = scmp.lt.s32.totalorder %s914_s13, %s910_s8 }
 0x346   : > { %p912_p5 = pnand %p911_p13, %p1221_p10 }
 0x347   : > { %p917_p3 = por %p916_p8, %p915_p4 }
 0x348   : > { %p913_p0 = pneg %p912_p5 }
 0x34a   : > { %p918_p11 = pnand %p917_p3, %p913_p0 }
 0x34c   : > { %921 = shalt.err (!%p918_p11)
}
 0x34d   : > { %s974_s27 = smov 128   ;;  %s975_s6 = smov 8  }
 0x34e   : > { %725 = dma.vmem_to_hbm [thread:$0]  (%p1221_p10), %s1153_s30, 384, %s1158_s24, %s517_s25, %s974_s27, %s974_s27, %s975_s6  }
 0x34f PF: > { %s545_s7 = sand.u32 1, %s952_s15   ;;  %p1222_p1 = scmp.ne.s32.totalorder %s1211_s22, 0 }
 0x350   : > { %p1223_p2 = scmp.ge.s32.totalorder %s964_s18, 2  ;;  %s546_s26 = scalar_lea.sflag [#allocation4], %s545_s7 }
 0x352   : > { %p739_p6 = pnand %p1223_p2, %p1222_p1 }
 0x354   : > { %p740_p12 = pneg %p739_p6 }
 0x356   : > { %947 = dma.done.wait (%p740_p12), %s546_s26, 384  }
 0x357   : > { %949 = vsyncadd (%p740_p12), %s546_s26, 4294966912  ;;  %p18_p7 = scmp.ge.s32.totalorder %s1073_s11, 4   ;;  %s1224_s15 = smov %s956_s16 }
 0x358   : > { %s1225_s16 = smov %s960_s17  ;;  %s1226_s17 = smov %s1089_s20 }
 0x359   : > { %s1227_s18 = smov %s1073_s11  ;;  %20 = sbr.rel (!%p18_p7) target bundleno = 6 (0x6), region = 89 }
 0x35e   :  { %551 = vsyncpa [#allocation3], 1 }
 0x35f   :  { %553 = vsyncpa [#allocation3 + $0x1], 1 }
 0x360   :  { %554 = vsyncpa [#allocation6], 1 }
 0x361   :  { %555 = vsyncpa [#allocation4], 1 }
 0x362   :  { %557 = vsyncpa [#allocation4 + $0x1], 1 }

</bundles_post_ra>
